<compile_context>
chip_gen: v6e
topology: v6e:2x2x1
jax: 0.10.0
libtpu: 0.0.40
codegen_flags: <defaults>
</compile_context>

<pallas_src>
import jax
import jax.numpy as jnp
from jax import lax
from jax.experimental import pallas as pl
from jax.experimental.pallas import tpu as pltpu


def _round_up(x, m):
    return ((x + m - 1) // m) * m


def r2v_encode_kernel(ids_ref, emb_ref, out_ref, acc_ref):
    """Count-matrix matmul gather + masked mean pool for one block of regions.

    ids_ref: (R, T)  int32  token ids for R regions (pad slots are -1)
    emb_ref: (TV, D) f32    one vocabulary tile of the embedding table
    out_ref: (R, D)  f32    pooled embeddings (written on the last vocab tile)
    acc_ref: (R, D)  f32    VMEM accumulator, persistent across the vocab axis
    """
    v = pl.program_id(1)
    R, T = ids_ref.shape
    TV, _ = emb_ref.shape

    @pl.when(v == 0)
    def _init():
        acc_ref[...] = jnp.zeros_like(acc_ref)

    ids = ids_ref[...]                                             # (R, T) int32
    v_start = v * TV
    col = lax.broadcasted_iota(jnp.int32, (R, TV), 1) + v_start    # (R, TV)

    # Per-region token-count rows for this vocab tile.  Pad ids (-1) and any
    # out-of-range ids match no column -> contribute zero (no OOB reads).
    counts = jnp.zeros((R, TV), jnp.float32)
    for t in range(T):                       # T is small and static; unrolled
        counts = counts + (ids[:, t:t + 1] == col).astype(jnp.float32)

    # MXU: sum of the gathered embedding rows covered by this vocab tile.
    acc_ref[...] += jnp.dot(counts, emb_ref[...],
                            preferred_element_type=jnp.float32)

    @pl.when(v == pl.num_programs(1) - 1)
    def _finalize():
        valid = jnp.sum((ids >= 0).astype(jnp.float32), axis=1, keepdims=True)
        denom = jnp.maximum(valid, 1.0)                            # (R, 1)
        out_ref[...] = (acc_ref[...] / denom).astype(out_ref.dtype)


def region2vec_encode(token_ids, emb_table, *,
                      block_regions=256, block_vocab=256):
    """token_ids: (N, T) int32 (pad = -1), emb_table: (V, D) f32 -> (N, D) f32."""
    N, T = token_ids.shape
    V, D = emb_table.shape

    R = min(block_regions, _round_up(N, 8))      # regions per grid step
    TV = min(block_vocab, _round_up(V, 128))     # vocab rows per grid step
    N_pad = _round_up(N, R)
    V_pad = _round_up(V, TV)
    D_pad = _round_up(D, 128)                    # lane-dense output

    ids_p = jnp.pad(token_ids.astype(jnp.int32),
                    ((0, N_pad - N), (0, 0)), constant_values=-1)
    emb_p = jnp.pad(emb_table.astype(jnp.float32),
                    ((0, V_pad - V), (0, D_pad - D)))

    grid = (N_pad // R, V_pad // TV)             # reduction (vocab) axis last

    out = pl.pallas_call(
        r2v_encode_kernel,
        out_shape=jax.ShapeDtypeStruct((N_pad, D_pad), jnp.float32),
        grid_spec=pltpu.PrefetchScalarGridSpec(
            num_scalar_prefetch=0,
            grid=grid,
            in_specs=[
                pl.BlockSpec((R, T), lambda i, v: (i, 0)),        # id tile
                pl.BlockSpec((TV, D_pad), lambda i, v: (v, 0)),   # emb vocab tile
            ],
            out_specs=pl.BlockSpec((R, D_pad), lambda i, v: (i, 0)),
            scratch_shapes=[pltpu.VMEM((R, D_pad), jnp.float32)],
        ),
        compiler_params=pltpu.CompilerParams(
            dimension_semantics=("parallel", "arbitrary"),
        ),
    )(ids_p, emb_p)

    return out[:N, :D]


if __name__ == "__main__":
    key = jax.random.PRNGKey(0)
    k_emb, k_ids, k_len = jax.random.split(key, 3)

    # Small synthetic shapes consistent with the forward:
    #   N = 16 input regions, up to T = 5 universe tokens per region,
    #   V = 512 universe size, D = 100 embedding dim (real r2v-encode dim).
    N, T, V, D = 16, 5, 512, 100

    emb_table = jax.random.normal(k_emb, (V, D), dtype=jnp.float32)
    token_ids = jax.random.randint(k_ids, (N, T), 0, V, dtype=jnp.int32)
    # Variable number of tokens per region: pad unused slots with -1.
    lengths = jax.random.randint(k_len, (N,), 1, T + 1, dtype=jnp.int32)
    token_ids = jnp.where(jnp.arange(T)[None, :] < lengths[:, None],
                          token_ids, -1)

    out = region2vec_encode(token_ids, emb_table)
    out = jax.block_until_ready(out)

    # Reference (plain JAX): masked gather + mean over valid tokens per region.
    mask = token_ids >= 0
    gathered = jnp.take(emb_table, jnp.where(mask, token_ids, 0), axis=0)
    ref = ((gathered * mask[:, :, None]).sum(axis=1)
           / jnp.maximum(mask.sum(axis=1, keepdims=True), 1))

    assert out.shape == (N, D)
    assert jnp.allclose(out, ref, atol=1e-4, rtol=1e-5)

    print("KERNEL_OK")
</pallas_src>

<mosaic_0001>
module attributes {stable_mosaic.version = 11 : i64} {
  func.func @r2v_encode_kernel(%arg0: i32, %arg1: i32, %arg2: memref<16x5xi32, #tpu.memory_space<vmem>>, %arg3: memref<256x128xf32, #tpu.memory_space<vmem>>, %arg4: memref<16x128xf32, #tpu.memory_space<vmem>>, %arg5: memref<16x128xf32, #tpu.memory_space<vmem>>) attributes {dimension_semantics = [#tpu.dimension_semantics<parallel>, #tpu.dimension_semantics<arbitrary>], iteration_bounds = array<i64: 1, 2>, scalar_prefetch = 0 : i64, scratch_operands = 1 : i64, tpu.core_type = #tpu.core_type<tc>, window_params = [{transform_indices = @transform_0, window_bounds = array<i64: 16, 5>}, {transform_indices = @transform_1, window_bounds = array<i64: 256, 128>}, {transform_indices = @transform_2, window_bounds = array<i64: 16, 128>}]} {
    %c0_i32 = arith.constant 0 : i32
    %0 = arith.cmpi eq, %arg1, %c0_i32 : i32
    %1 = arith.extui %0 : i1 to i32
    %c0_i32_0 = arith.constant 0 : i32
    %2 = arith.cmpi ne, %1, %c0_i32_0 : i32
    scf.if %2 {
      %cst_10 = arith.constant 0.000000e+00 : f32
      %47 = vector.broadcast %cst_10 : f32 to vector<16x128xf32>
      %c0_11 = arith.constant 0 : index
      %c0_12 = arith.constant 0 : index
      %48 = vector.load %arg5[%c0_11, %c0_12] : memref<16x128xf32, #tpu.memory_space<vmem>>, vector<16x128xf32>
      tpu.vector_store %arg5[%c0_11, %c0_12], %47 {strides = array<i32>} : memref<16x128xf32, #tpu.memory_space<vmem>>, vector<16x128xf32>,
    } else {
    }
    %c0 = arith.constant 0 : index
    %c0_1 = arith.constant 0 : index
    %3 = vector.load %arg2[%c0, %c0_1] : memref<16x5xi32, #tpu.memory_space<vmem>>, vector<16x5xi32>
    %c256_i32 = arith.constant 256 : i32
    %4 = arith.muli %arg1, %c256_i32 : i32
    %5 = tpu.iota {dimensions = array<i32: 1>} : vector<16x256xi32>
    %6 = vector.broadcast %4 : i32 to vector<16x256xi32>
    %7 = arith.addi %5, %6 : vector<16x256xi32>
    %cst = arith.constant 0.000000e+00 : f32
    %8 = vector.broadcast %cst : f32 to vector<16x256xf32>
    %9 = vector.extract_strided_slice %3 {offsets = [0, 0], sizes = [16, 1], strides = [1, 1]} : vector<16x5xi32> to vector<16x1xi32>
    %10 = vector.broadcast %9 : vector<16x1xi32> to vector<16x256xi32>
    %11 = arith.cmpi eq, %10, %7 : vector<16x256xi32>
    %12 = arith.extui %11 : vector<16x256xi1> to vector<16x256xi32>
    %13 = arith.sitofp %12 : vector<16x256xi32> to vector<16x256xf32>
    %14 = arith.addf %8, %13 : vector<16x256xf32>
    %15 = vector.extract_strided_slice %3 {offsets = [0, 1], sizes = [16, 1], strides = [1, 1]} : vector<16x5xi32> to vector<16x1xi32>
    %16 = vector.broadcast %15 : vector<16x1xi32> to vector<16x256xi32>
    %17 = arith.cmpi eq, %16, %7 : vector<16x256xi32>
    %18 = arith.extui %17 : vector<16x256xi1> to vector<16x256xi32>
    %19 = arith.sitofp %18 : vector<16x256xi32> to vector<16x256xf32>
    %20 = arith.addf %14, %19 : vector<16x256xf32>
    %21 = vector.extract_strided_slice %3 {offsets = [0, 2], sizes = [16, 1], strides = [1, 1]} : vector<16x5xi32> to vector<16x1xi32>
    %22 = vector.broadcast %21 : vector<16x1xi32> to vector<16x256xi32>
    %23 = arith.cmpi eq, %22, %7 : vector<16x256xi32>
    %24 = arith.extui %23 : vector<16x256xi1> to vector<16x256xi32>
    %25 = arith.sitofp %24 : vector<16x256xi32> to vector<16x256xf32>
    %26 = arith.addf %20, %25 : vector<16x256xf32>
    %27 = vector.extract_strided_slice %3 {offsets = [0, 3], sizes = [16, 1], strides = [1, 1]} : vector<16x5xi32> to vector<16x1xi32>
    %28 = vector.broadcast %27 : vector<16x1xi32> to vector<16x256xi32>
    %29 = arith.cmpi eq, %28, %7 : vector<16x256xi32>
    %30 = arith.extui %29 : vector<16x256xi1> to vector<16x256xi32>
    %31 = arith.sitofp %30 : vector<16x256xi32> to vector<16x256xf32>
    %32 = arith.addf %26, %31 : vector<16x256xf32>
    %33 = vector.extract_strided_slice %3 {offsets = [0, 4], sizes = [16, 1], strides = [1, 1]} : vector<16x5xi32> to vector<16x1xi32>
    %34 = vector.broadcast %33 : vector<16x1xi32> to vector<16x256xi32>
    %35 = arith.cmpi eq, %34, %7 : vector<16x256xi32>
    %36 = arith.extui %35 : vector<16x256xi1> to vector<16x256xi32>
    %37 = arith.sitofp %36 : vector<16x256xi32> to vector<16x256xf32>
    %38 = arith.addf %32, %37 : vector<16x256xf32>
    %c0_2 = arith.constant 0 : index
    %c0_3 = arith.constant 0 : index
    %39 = vector.load %arg5[%c0_2, %c0_3] : memref<16x128xf32, #tpu.memory_space<vmem>>, vector<16x128xf32>
    %c0_4 = arith.constant 0 : index
    %c0_5 = arith.constant 0 : index
    %40 = vector.load %arg3[%c0_4, %c0_5] : memref<256x128xf32, #tpu.memory_space<vmem>>, vector<256x128xf32>
    %cst_6 = arith.constant dense<0.000000e+00> : vector<16x128xf32>
    %41 = tpu.matmul %38, %40, %cst_6 {dimension_numbers = #tpu.dot_dimension_numbers<[1], [0], [0], [1], [0, 0, 1, 1], [], []>} : vector<16x256xf32>, vector<256x128xf32>, vector<16x128xf32> -> vector<16x128xf32>
    %42 = arith.addf %39, %41 : vector<16x128xf32>
    %c0_7 = arith.constant 0 : index
    %c0_8 = arith.constant 0 : index
    %43 = vector.load %arg5[%c0_7, %c0_8] : memref<16x128xf32, #tpu.memory_space<vmem>>, vector<16x128xf32>
    tpu.vector_store %arg5[%c0_7, %c0_8], %42 {strides = array<i32>} : memref<16x128xf32, #tpu.memory_space<vmem>>, vector<16x128xf32>,
    %c1_i32 = arith.constant 1 : i32
    %44 = arith.cmpi eq, %arg1, %c1_i32 : i32
    %45 = arith.extui %44 : i1 to i32
    %c0_i32_9 = arith.constant 0 : i32
    %46 = arith.cmpi ne, %45, %c0_i32_9 : i32
    scf.if %46 {
      %c0_i32_10 = arith.constant 0 : i32
      %47 = vector.broadcast %c0_i32_10 : i32 to vector<16x5xi32>
      %48 = arith.cmpi sge, %3, %47 : vector<16x5xi32>
      %49 = arith.extui %48 : vector<16x5xi1> to vector<16x5xi32>
      %50 = arith.sitofp %49 : vector<16x5xi32> to vector<16x5xf32>
      %cst_11 = arith.constant dense<0.000000e+00> : vector<16xf32>
      %51 = vector.multi_reduction <add>, %50, %cst_11 [1] : vector<16x5xf32> to vector<16xf32>
      %52 = vector.shape_cast %51 : vector<16xf32> to vector<16x1xf32>
      %cst_12 = arith.constant 1.000000e+00 : f32
      %53 = vector.broadcast %cst_12 : f32 to vector<16x1xf32>
      %54 = arith.maximumf %52, %53 : vector<16x1xf32>
      %c0_13 = arith.constant 0 : index
      %c0_14 = arith.constant 0 : index
      %55 = vector.load %arg5[%c0_13, %c0_14] : memref<16x128xf32, #tpu.memory_space<vmem>>, vector<16x128xf32>
      %56 = vector.broadcast %54 : vector<16x1xf32> to vector<16x128xf32>
      %57 = arith.divf %55, %56 : vector<16x128xf32>
      %c0_15 = arith.constant 0 : index
      %c0_16 = arith.constant 0 : index
      %58 = vector.load %arg4[%c0_15, %c0_16] : memref<16x128xf32, #tpu.memory_space<vmem>>, vector<16x128xf32>
      tpu.vector_store %arg4[%c0_15, %c0_16], %57 {strides = array<i32>} : memref<16x128xf32, #tpu.memory_space<vmem>>, vector<16x128xf32>,
    } else {
    }
    return
  }
  func.func @transform_0(%arg0: i32, %arg1: i32) -> (i32, i32) {
    %c0_i32 = arith.constant 0 : i32
    %c0_i32_0 = arith.constant 0 : i32
    return %arg0, %c0_i32 : i32, i32
  }
  func.func @transform_1(%arg0: i32, %arg1: i32) -> (i32, i32) {
    %c0_i32 = arith.constant 0 : i32
    %c0_i32_0 = arith.constant 0 : i32
    return %arg1, %c0_i32 : i32, i32
  }
  func.func @transform_2(%arg0: i32, %arg1: i32) -> (i32, i32) {
    %c0_i32 = arith.constant 0 : i32
    %c0_i32_0 = arith.constant 0 : i32
    return %arg0, %c0_i32 : i32, i32
  }
}

</mosaic_0001>

<bundles_post_ra>
// kernel: tpu_custom_call.1
= control target key start
LH: loop header
LB: loop body
LE: loop exit
PB: predicated region body
PF: predicated region fallthrough
CT: control target
= control target key end

     0   :  { %7 = vsyncpa [#allocation4], 0  ;;  %s1069_s0 = inlined_call_operand.vmem [shape: s32[16,5], index: 0, kind: input, shape index: {}]   ;;  %s1070_s1 = inlined_call_operand.hbm [shape: f32[512,128], index: 1, kind: input, shape index: {}]   ;;  %s1071_s2 = inlined_call_operand.hbm [shape: f32[16,128], index: 2, kind: output, shape index: {}]  }
   0x1   :  { %9 = vsyncpa [#allocation4 + $0x1], 0 }
   0x2   :  { %10 = vsyncpa [#allocation5], 0  ;;  %s876_s9 = smov 0   ;;  %s878_s10 = smov 0  }
   0x3   :  { %s880_s11 = smov 0   ;;  %s882_s12 = smov 0  }
   0x4   :  { %s884_s13 = smov 0   ;;  %s886_s14 = smov 0  }
   0x5 LB: > { %s544_s15 = sadd.s32 4294967295, %s845_s14   ;;  %s25_s16 = sadd.s32 1, %s841_s13  ;;  %s845_s14 = sphi %s886_s14, %s16_s14   ;;  %s841_s13 = sphi %s884_s13, %s1080_s13   ;;  %s837_s12 = sphi %s882_s12, %s1079_s12   ;;  %s833_s11 = sphi %s880_s11, %s1078_s11   ;;  %s829_s10 = sphi %s878_s10, %s1077_s10   ;;  %s825_s9 = sphi %s876_s9, %s1076_s9  }
   0x6   : > { %p26_p0 = scmp.ge.s32.totalorder %s25_s16, 2  ;;  %s61_s17 = sadd.s32 1, %s833_s11 }
   0x7   : > { %p68_p1 = scmp.ne.s32.totalorder %s833_s11, %s829_s10  ;;  %p69_p2 = scmp.eq.s32.totalorder %s845_s14, 0 }
   0x8   : > { %s1082_s16 = smov (%p26_p0, %s25_s16), 0  ;;  %p74_p4 = scmp.ne.s32.totalorder %s829_s10, %s825_s9 }
   0x9   : > { %p912_p3 = por %p69_p2, %p68_p1  ;;  %s58_s19 = ssub.s32 %s841_s13, %s1082_s16 }
   0xa   : > { %p75_p5 = scmp.eq.s32.totalorder %s544_s15, 0  ;;  %p59_p6 = scmp.eq.s32.totalorder %s58_s19, 0 }
   0xb   : > { %p663_p8 = scmp.lt.s32.totalorder %s845_s14, 2  ;;  %s133_s22 = sand.u32 1, %s833_s11  }
   0xc   : > { %p921_p7 = por %p75_p5, %p74_p4  ;;  %s582_s23 = sshll.u32 %s841_s13, 12 }
   0xd   : > { %s927_s21 = scalar_select %p59_p6, %s833_s11, %s61_s17  }
   0xe   : > { %s548_s24 = sshll.u32 %s133_s22, 8  ;;  %s143_s27 = scalar_lea.hbm %s1070_s1, %s582_s23 }
   0xf   : > { %s137_s28 = scalar_lea.vmem [#allocation3], %s548_s24  ;;  %p936_p9 = pnand %p663_p8, %p912_p3 }
  0x10   : > { %s144_s29 = sshll.u32 %s137_s28, 4  ;;  %s134_s3 = scalar_lea.sflag [#allocation4], %s133_s22  ;;  %s145_s29 = int_to_ptr.vmem [resolvable:$true] %s144_s29 }
  0x11   : > { %p741_p10 = pneg %p936_p9  ;;  %s752_s4 = scalar_lea.vmem %s145_s29, 4096 }
  0x12   : > { %p753_p11 = scmp.ne.s32.totalorder %s145_s29, %s752_s4  ;;  %s847_s5 = smov [#allocation3]  }
  0x13   : > { %s757_s6 = sshll.u32 %s847_s5, 4  ;;  %s758_s6 = int_to_ptr.vmem [resolvable:$false] %s757_s6 }
  0x14   : > { %p755_p12 = pnand %p753_p11, %p741_p10  ;;  %s759_s7 = scalar_lea.vmem %s758_s6, 8192 }
  0x15   : > { %p760_p0 = scmp.lt.s32.totalorder %s145_s29, %s758_s6  ;;  %p761_p1 = scmp.lt.s32.totalorder %s759_s7, %s752_s4 }
  0x16   : > { %p756_p13 = pneg %p755_p12 }
  0x17   : > { %p762_p2 = por %p761_p1, %p760_p0 }
  0x19   : > { %p763_p3 = pnand %p762_p2, %p756_p13 }
  0x1b   : > { %766 = shalt.err (!%p763_p3)
}
  0x1c   : > { %s848_s8 = smov 128   ;;  %s849_s9 = smov 8  }
  0x1d   : > { %662 = dma.hbm_to_vmem [thread:$0]  (!%p936_p9), %s143_s27, 4096, %s145_s29, %s134_s3, %s848_s8, %s848_s8, %s849_s9  }
  0x1e   : > { %p551_p4 = scmp.ge.s32.totalorder %s845_s14, 1  ;;  %p152_p5 = scmp.lt.s32.totalorder %s845_s14, 3 }
  0x20   : > { %p153_p6 = pnand %p551_p4, %p152_p5 }
  0x21   : > { %s158_s17 = sand.u32 (!%p153_p6), 1, %s829_s10  }
  0x22   : > { %156 = sbr.rel (%p153_p6) target bundleno = 583 (0x247), region = 28  ;;  %s552_s18 = sshll.u32 (!%p153_p6), %s158_s17, 8 }
  0x23   : > { %s159_s19 = scalar_lea.sflag (!%p153_p6), [#allocation4], %s158_s17  ;;  %s947_s22 = scalar_lea.vmem (!%p153_p6), [#allocation3], %s552_s18 }
  0x27   : > { %816 = dma.done.wait (%p921_p7), %s159_s19, 4096  }
  0x28   : > { %818 = vsyncadd (%p921_p7), %s159_s19, 4294963200  ;;  %p553_p8 = scmp.ne.s32.totalorder %s837_s12, 0 }
  0x2a   : > { %194 = sbr.rel (%p553_p8) target bundleno = 49 (0x31), region = 36 }
  0x2f   : > { %v850_v0 = vmov 0.0  }
  0x30   : > { %195 = vst [vmem:[#allocation2] sm:$0xff] %v850_v0  ;;  %196 = vst [vmem:[#allocation2 + $0x8] sm:$0xff] %v850_v0 }
  0x31 PF: > { %v957_v1 = vld [vmem:[%s1069_s0] sm:$0xff]  ;;  %v851_v2 = vmov 1   ;;  %v852_v3 = vmov 0   ;;  %v349_v4 = vld [vmem:[%s947_s22 + $0xf8] sm:$0xff]  ;;  %v347_v9 = vld [vmem:[%s947_s22 + $0xe8] sm:$0xff]  ;;  %v853_v12 = vmov 2   ;;  %v200_v40 = vlaneseq }
  0x32   : > { %728 = vset.pattern.permute.xlu1 %v851_v2  ;;  %727 = vset.pattern.permute.xlu0 %v852_v3  ;;  %v333_v5 = vld [vmem:[%s947_s22 + $0x78] sm:$0xff]  ;;  %v348_v6 = vld [vmem:[%s947_s22 + $0xf0] sm:$0xff]  ;;  %v331_v10 = vld [vmem:[%s947_s22 + $0x68] sm:$0xff]  ;;  %v854_v16 = vmov 3   ;;  %v855_v22 = vmov 4   ;;  %s554_s26 = sshll.u32 %s837_s12, 8 }
  0x33   : > { %229 = vperm.xlu1 %728, %v957_v1   ;;  %207 = vperm.xlu0 %727, %v957_v1   ;;  %v967_v7 = vld [vmem:[%s1069_s0 + $0x8] sm:$0xff]  ;;  %v332_v8 = vld [vmem:[%s947_s22 + $0x70] sm:$0xff]  ;;  %v346_v11 = vld [vmem:[%s947_s22 + $0xe0] sm:$0xff]  ;;  %v201_v41 = vand.u32 127, %v200_v40  ;;  %v203_v43 = vstv %s554_s26  ;;  %v856_v52 = vmov 0.0   ;;  %p575_p7 = scmp.ne.s32.totalorder %s837_s12, 1 }
  0x34   : > { %583 = vmatprep.subr.mxu0 %v349_v4  ;;  %621 = vmatprep.subr.mxu1 %v349_v4  ;;  %v330_v13 = vld [vmem:[%s947_s22 + $0x60] sm:$0xff]  ;;  %v345_v14 = vld [vmem:[%s947_s22 + $0xd8] sm:$0xff]  ;;  %v344_v17 = vld [vmem:[%s947_s22 + $0xd0] sm:$0xff] }
  0x35   : > { %584 = vmatpush3.msra.mxu0 %v333_v5  ;;  %637 = vmatpush3.msra.mxu1 %v333_v5  ;;  %v329_v15 = vld [vmem:[%s947_s22 + $0x58] sm:$0xff]  ;;  %v328_v18 = vld [vmem:[%s947_s22 + $0x50] sm:$0xff]  ;;  %v343_v19 = vld [vmem:[%s947_s22 + $0xc8] sm:$0xff]  ;;  %v202_v42 = vadd.s32 128, %v201_v41  ;;  %v1007_v46 = vadd.s32 %v203_v43, %v201_v41 }
  0x36   : > { %585 = vmatprep.subr.mxu0 %v348_v6  ;;  %622 = vmatprep.subr.mxu1 %v348_v6  ;;  %v327_v20 = vld [vmem:[%s947_s22 + $0x48] sm:$0xff]  ;;  %v342_v21 = vld [vmem:[%s947_s22 + $0xc0] sm:$0xff]  ;;  %v341_v24 = vld [vmem:[%s947_s22 + $0xb8] sm:$0xff] }
  0x37   : > { %232 = vperm.xlu1 %728, %v967_v7   ;;  %210 = vperm.xlu0 %727, %v967_v7   ;;  %v326_v23 = vld [vmem:[%s947_s22 + $0x40] sm:$0xff]  ;;  %v325_v25 = vld [vmem:[%s947_s22 + $0x38] sm:$0xff]  ;;  %v340_v26 = vld [vmem:[%s947_s22 + $0xb0] sm:$0xff]  ;;  %v1009_v47 = vadd.s32 %v203_v43, %v202_v42 }
  0x38   : > { %586 = vmatpush3.msra.mxu0 %v332_v8  ;;  %638 = vmatpush3.msra.mxu1 %v332_v8  ;;  %v324_v27 = vld [vmem:[%s947_s22 + $0x30] sm:$0xff]  ;;  %v339_v28 = vld [vmem:[%s947_s22 + $0xa8] sm:$0xff]  ;;  %v338_v30 = vld [vmem:[%s947_s22 + $0xa0] sm:$0xff] }
  0x39   : > { %587 = vmatprep.subr.mxu0 %v347_v9  ;;  %623 = vmatprep.subr.mxu1 %v347_v9  ;;  %v323_v29 = vld [vmem:[%s947_s22 + $0x28] sm:$0xff]  ;;  %v322_v31 = vld [vmem:[%s947_s22 + $0x20] sm:$0xff]  ;;  %v337_v32 = vld [vmem:[%s947_s22 + $0x98] sm:$0xff] }
  0x3a   : > { %588 = vmatpush3.msra.mxu0 %v331_v10  ;;  %639 = vmatpush3.msra.mxu1 %v331_v10  ;;  %v321_v33 = vld [vmem:[%s947_s22 + $0x18] sm:$0xff]  ;;  %v336_v34 = vld [vmem:[%s947_s22 + $0x90] sm:$0xff]  ;;  %v335_v36 = vld [vmem:[%s947_s22 + $0x88] sm:$0xff] }
  0x3b   : > { %730 = vset.pattern.permute.xlu1 %v853_v12  ;;  %729 = vset.pattern.permute.xlu0 %v853_v12  ;;  %v320_v35 = vld [vmem:[%s947_s22 + $0x10] sm:$0xff]  ;;  %v319_v37 = vld [vmem:[%s947_s22 + $0x8] sm:$0xff]  ;;  %v334_v38 = vld [vmem:[%s947_s22 + $0x80] sm:$0xff] }
  0x3c   : > { %254 = vperm.xlu1 %730, %v967_v7   ;;  %251 = vperm.xlu0 %729, %v957_v1   ;;  %v318_v39 = vld [vmem:[%s947_s22] sm:$0xff] }
  0x3d   : > { %589 = vmatprep.subr.mxu0 %v346_v11  ;;  %624 = vmatprep.subr.mxu1 %v346_v11 }
  0x3e   : > { %590 = vmatpush3.msra.mxu0 %v330_v13  ;;  %640 = vmatpush3.msra.mxu1 %v330_v13 }
  0x3f   : > { %591 = vmatprep.subr.mxu0 %v345_v14  ;;  %625 = vmatprep.subr.mxu1 %v345_v14 }
  0x40   : > { %731 = vset.pattern.permute.xlu1 %v854_v16  ;;  %732 = vset.pattern.permute.xlu0 %v854_v16 }
  0x41   : > { %273 = vperm.xlu1 %731, %v957_v1   ;;  %276 = vperm.xlu0 %732, %v967_v7  }
  0x42   : > { %592 = vmatpush3.msra.mxu0 %v329_v15  ;;  %641 = vmatpush3.msra.mxu1 %v329_v15 }
  0x43   : > { %593 = vmatprep.subr.mxu0 %v344_v17  ;;  %626 = vmatprep.subr.mxu1 %v344_v17 }
  0x44   : > { %594 = vmatpush3.msra.mxu0 %v328_v18  ;;  %642 = vmatpush3.msra.mxu1 %v328_v18 }
  0x45   : > { %733 = vset.pattern.permute.xlu1 %v855_v22  ;;  %595 = vmatprep.subr.mxu0 %v343_v19 }
  0x46   : > { %295 = vperm.xlu1 %733, %v957_v1   ;;  %596 = vmatpush3.msra.mxu0 %v327_v20 }
  0x47   : > { %597 = vmatprep.subr.mxu0 %v342_v21  ;;  %627 = vmatprep.subr.mxu1 %v343_v19 }
  0x48   : > { %598 = vmatpush3.msra.mxu0 %v326_v23  ;;  %643 = vmatpush3.msra.mxu1 %v327_v20 }
  0x49   : > { %599 = vmatprep.subr.mxu0 %v341_v24  ;;  %628 = vmatprep.subr.mxu1 %v342_v21 }
  0x4a   : > { %298 = vperm.xlu1 %733, %v967_v7   ;;  %600 = vmatpush3.msra.mxu0 %v325_v25 }
  0x4b   : > { %601 = vmatprep.subr.mxu0 %v340_v26  ;;  %644 = vmatpush3.msra.mxu1 %v326_v23 }
  0x4c   : > { %602 = vmatpush3.msra.mxu0 %v324_v27  ;;  %629 = vmatprep.subr.mxu1 %v341_v24 }
  0x4d   : > { %603 = vmatprep.subr.mxu0 %v339_v28  ;;  %645 = vmatpush3.msra.mxu1 %v325_v25 }
  0x4e   : > { %604 = vmatpush3.msra.mxu0 %v323_v29  ;;  %630 = vmatprep.subr.mxu1 %v340_v26 }
  0x4f   : > { %605 = vmatprep.subr.mxu0 %v338_v30  ;;  %646 = vmatpush3.msra.mxu1 %v324_v27 }
  0x50   : > { %606 = vmatpush3.msra.mxu0 %v322_v31  ;;  %631 = vmatprep.subr.mxu1 %v339_v28 }
  0x51   : > { %607 = vmatprep.subr.mxu0 %v337_v32  ;;  %647 = vmatpush3.msra.mxu1 %v323_v29 }
  0x52   : > { %608 = vmatpush3.msra.mxu0 %v321_v33  ;;  %632 = vmatprep.subr.mxu1 %v338_v30 }
  0x53   : > { %609 = vmatprep.subr.mxu0 %v336_v34  ;;  %648 = vmatpush3.msra.mxu1 %v322_v31 }
  0x54   : > { %610 = vmatpush3.msra.mxu0 %v320_v35  ;;  %633 = vmatprep.subr.mxu1 %v337_v32  ;;  %v316_v32 = vld [vmem:[#allocation2] sm:$0xff] }
  0x55   : > { %611 = vmatprep.subr.mxu0 %v335_v36  ;;  %649 = vmatpush3.msra.mxu1 %v321_v33 }
  0x56   : > { %612 = vmatpush3.msra.mxu0 %v319_v37  ;;  %634 = vmatprep.subr.mxu1 %v336_v34 }
  0x57   : > { %613 = vmatprep.subr.mxu0 %v334_v38  ;;  %650 = vmatpush3.msra.mxu1 %v320_v35 }
  0x58   : > { %614 = vmatpush3.msra.mxu0 %v318_v39  ;;  %635 = vmatprep.subr.mxu1 %v335_v36 }
  0x59   : > { %651 = vmatpush3.msra.mxu1 %v319_v37  ;;  %734 = vset.pattern.permute.xlu0 %v855_v22  ;;  %v317_v37 = vld [vmem:[#allocation2 + $0x8] sm:$0xff] }
  0x5a   : > { %636 = vmatprep.subr.mxu1 %v334_v38 }
  0x5b   : > { %652 = vmatpush3.msra.mxu1 %v318_v39 }
  0xae   : > { %v230_v44 = vpop.permute.xlu1 %229  ;;  %v208_v45 = vpop.permute.xlu0 %207 }
  0xaf   : > { %vm234_vm0 = vcmp.eq.s32.totalorder %v230_v44, %v1007_v46  ;;  %vm235_vm1 = vcmp.eq.s32.totalorder %v230_v44, %v1009_v47  ;;  %vm212_vm2 = vcmp.eq.s32.totalorder %v208_v45, %v1007_v46  ;;  %vm213_vm3 = vcmp.eq.s32.totalorder %v208_v45, %v1009_v47 }
  0xb0   : > { %v559_v53 = vsel %vm234_vm0, 1.0, %v856_v52  ;;  %v560_v54 = vsel %vm235_vm1, 1.0, %v856_v52  ;;  %v555_v55 = vsel %vm212_vm2, 1.0, %v856_v52  ;;  %v556_v56 = vsel %vm213_vm3, 1.0, %v856_v52 }
  0xb1   : > { %v246_v57 = vadd.f32 %v559_v53, %v555_v55  ;;  %v247_v58 = vadd.f32 %v560_v54, %v556_v56 }
  0xb2   : > { %v233_v48 = vpop.permute.xlu1 %232  ;;  %v211_v49 = vpop.permute.xlu0 %210 }
  0xb3   : > { %vm236_vm4 = vcmp.eq.s32.totalorder %v233_v48, %v1007_v46  ;;  %vm237_vm5 = vcmp.eq.s32.totalorder %v233_v48, %v1009_v47  ;;  %vm214_vm8 = vcmp.eq.s32.totalorder %v211_v49, %v1007_v46  ;;  %vm215_vm9 = vcmp.eq.s32.totalorder %v211_v49, %v1009_v47 }
  0xb4   : > { %v561_v59 = vsel %vm236_vm4, 1.0, %v856_v52  ;;  %v562_v60 = vsel %vm237_vm5, 1.0, %v856_v52  ;;  %v557_v2 = vsel %vm214_vm8, 1.0, %v856_v52  ;;  %v558_v3 = vsel %vm215_vm9, 1.0, %v856_v52 }
  0xb5   : > { %v248_v9 = vadd.f32 %v561_v59, %v557_v2  ;;  %v249_v10 = vadd.f32 %v562_v60, %v558_v3 }
  0xb7   : > { %v255_v50 = vpop.permute.xlu1 %254  ;;  %v252_v51 = vpop.permute.xlu0 %251 }
  0xb8   : > { %vm256_vm6 = vcmp.eq.s32.totalorder %v252_v51, %v1007_v46  ;;  %vm257_vm7 = vcmp.eq.s32.totalorder %v252_v51, %v1009_v47  ;;  %vm258_vm12 = vcmp.eq.s32.totalorder %v255_v50, %v1007_v46  ;;  %vm259_vm13 = vcmp.eq.s32.totalorder %v255_v50, %v1009_v47 }
  0xb9   : > { %v563_v62 = vsel %vm256_vm6, 1.0, %v856_v52  ;;  %v564_v63 = vsel %vm257_vm7, 1.0, %v856_v52  ;;  %v565_v11 = vsel %vm258_vm12, 1.0, %v856_v52  ;;  %v566_v12 = vsel %vm259_vm13, 1.0, %v856_v52 }
  0xba   : > { %v268_v6 = vadd.f32 %v563_v62, %v246_v57  ;;  %v269_v8 = vadd.f32 %v564_v63, %v247_v58  ;;  %v270_v20 = vadd.f32 %v565_v11, %v248_v9  ;;  %v271_v21 = vadd.f32 %v566_v12, %v249_v10 }
  0xbc   : > { %v274_v61 = vpop.permute.xlu1 %273  ;;  %v277_v0 = vpop.permute.xlu0 %276 }
  0xbd   : > { %vm278_vm10 = vcmp.eq.s32.totalorder %v274_v61, %v1007_v46  ;;  %vm279_vm11 = vcmp.eq.s32.totalorder %v274_v61, %v1009_v47  ;;  %vm280_vm14 = vcmp.eq.s32.totalorder %v277_v0, %v1007_v46  ;;  %vm281_vm15 = vcmp.eq.s32.totalorder %v277_v0, %v1009_v47 }
  0xbe   : > { %v567_v4 = vsel %vm278_vm10, 1.0, %v856_v52  ;;  %v568_v5 = vsel %vm279_vm11, 1.0, %v856_v52  ;;  %v569_v16 = vsel %vm280_vm14, 1.0, %v856_v52  ;;  %v570_v17 = vsel %vm281_vm15, 1.0, %v856_v52 }
  0xbf   : > { %v290_v14 = vadd.f32 %v567_v4, %v268_v6  ;;  %v291_v15 = vadd.f32 %v568_v5, %v269_v8  ;;  %v292_v25 = vadd.f32 %v569_v16, %v270_v20  ;;  %v293_v26 = vadd.f32 %v570_v17, %v271_v21 }
  0xc1   : > { %v296_v13 = vpop.permute.xlu1 %295 }
  0xc2   : > { %vm300_vm0 = vcmp.eq.s32.totalorder %v296_v13, %v1007_v46  ;;  %vm301_vm1 = vcmp.eq.s32.totalorder %v296_v13, %v1009_v47 }
  0xc3   : > { %v571_v18 = vsel %vm300_vm0, 1.0, %v856_v52  ;;  %v572_v19 = vsel %vm301_vm1, 1.0, %v856_v52 }
  0xc4   : > { %v312_v22 = vadd.f32 %v571_v18, %v290_v14  ;;  %v313_v23 = vadd.f32 %v572_v19, %v291_v15 }
  0xc5   : > { %v299_v24 = vpop.permute.xlu1 %298 }
  0xc6   : > { %vm302_vm2 = vcmp.eq.s32.totalorder %v299_v24, %v1007_v46  ;;  %vm303_vm3 = vcmp.eq.s32.totalorder %v299_v24, %v1009_v47  ;;  %414 = vmatprep.mubr.f32.mxu0 %v313_v23 }
  0xc7   : > { %v573_v27 = vsel %vm302_vm2, 1.0, %v856_v52  ;;  %415 = vmatmul.mubr.f32.vlgmr.msra.gmra.mxu0 %v312_v22  ;;  %v574_v28 = vsel %vm303_vm3, 1.0, %v856_v52 }
  0xc8   : > { %v314_v29 = vadd.f32 %v573_v27, %v292_v25  ;;  %v315_v30 = vadd.f32 %v574_v28, %v293_v26 }
  0xca   : > { %419 = vmatprep.mubr.f32.mxu1 %v315_v30 }
  0xcb   : > { %420 = vmatmul.mubr.f32.vlgmr.msra.gmra.mxu1 %v314_v29 }
 0x187   : > { %v615_v31 = vpop.f32.mrf.mxu0 }
 0x189   : > { %v616_v33 = vpop.f32.mrf.mxu0 }
 0x18a   : > { %v617_v34 = vadd.f32 %v616_v33, %v615_v31 }
 0x18b   : > { %v618_v35 = vpop.f32.mrf.mxu1 }
 0x18c   : > { %v425_v36 = vadd.f32 %v617_v34, %v316_v32 }
 0x18d   : > { %v619_v38 = vpop.f32.mrf.mxu1 }
 0x18e   : > { %427 = vst [vmem:[#allocation2] sm:$0xff] %v425_v36  ;;  %v620_v39 = vadd.f32 %v619_v38, %v618_v35  ;;  %432 = sbr.rel (%p575_p7) target bundleno = 567 (0x237), region = 40 }
 0x190   : > { %v426_v40 = vadd.f32 %v620_v39, %v317_v37 }
 0x192   : > { %428 = vst [vmem:[#allocation2 + $0x8] sm:$0xff] %v426_v40 }
 0x193   : > { %vm433_vm4 = vcmp.ge.s32.totalorder %v957_v1, 0  ;;  %vm439_vm5 = vcmask 39936   ;;  %vm434_vm6 = vcmp.ge.s32.totalorder %v967_v7, 0  ;;  %v857_v41 = vmov 0.0  }
 0x194   : > { %v576_v42 = vsel %vm433_vm4, 1.0, %v857_v41  ;;  %v577_v43 = vsel %vm434_vm6, 1.0, %v857_v41 }
 0x195   : > { %v440_v44 = vsel %vm439_vm5, %v576_v42, 0.0  ;;  %v443_v45 = vsel %vm439_vm5, %v577_v43, 0.0  ;;  %v448_v50 = vld [vmem:[#allocation2] sm:$0xff] }
 0x196   : > { %441 = vadd.xlane.f32.xlu0 %v440_v44 }
 0x199   : > { %v449_v1 = vld [vmem:[#allocation2 + $0x8] sm:$0xff] }
 0x19a   : > { %444 = vadd.xlane.f32.xlu0 %v443_v45 }
 0x21f   : > { %v442_v46 = vpop.xlane.xlu0 %441 }
 0x220   : > { %v446_v47 = vmax.f32 %v442_v46, 1.0 }
 0x222   : > { %735 = vrcp.f32 %v446_v47 }
 0x223   : > { %v445_v48 = vpop.xlane.xlu0 %444 }
 0x224   : > { %v447_v49 = vmax.f32 %v445_v48, 1.0 }
 0x226   : > { %737 = vrcp.f32 %v447_v49 }
 0x22f   : > { %v736_v51 = vpop.eup %735 }
 0x230   : > { %v451_v52 = vmul.f32 %v736_v51, %v448_v50 }
 0x232   : > { %454 = vst [vmem:[#allocation6] sm:$0xff] %v451_v52 }
 0x233   : > { %v738_v53 = vpop.eup %737 }
 0x234   : > { %v453_v7 = vmul.f32 %v738_v53, %v449_v1 }
 0x236   : > { %455 = vst [vmem:[#allocation6 + $0x8] sm:$0xff] %v453_v7 }
 0x237 PF: > { %p1036_p9 = scmp.eq.s32.totalorder %s544_s15, 1  ;;  %s858_s27 = smov [#allocation6]  }
 0x238   : > { %s465_s28 = sshll.u32 %s858_s27, 4  ;;  %s466_s28 = int_to_ptr.vmem [resolvable:$true] %s465_s28 }
 0x239   : > { %s767_s29 = scalar_lea.vmem %s466_s28, 256  ;;  %p774_p13 = scmp.lt.s32.totalorder %s466_s28, %s466_s28 }
 0x23a   : > { %p768_p10 = scmp.ne.s32.totalorder %s466_s28, %s767_s29  ;;  %p775_p0 = scmp.lt.s32.totalorder %s767_s29, %s767_s29 }
 0x23c   : > { %p769_p11 = pnand %p768_p10, %p1036_p9  ;;  %p776_p1 = por %p775_p0, %p774_p13 }
 0x23e   : > { %p770_p12 = pneg %p769_p11 }
 0x240   : > { %p777_p2 = pnand %p776_p1, %p770_p12 }
 0x242   : > { %780 = shalt.err (!%p777_p2)
}
 0x243   : > { %s859_s30 = smov 128   ;;  %s860_s15 = smov 8  }
 0x244   : > { %656 = dma.vmem_to_hbm [thread:$0]  (%p1036_p9), %s466_s28, 256, %s1071_s2, [#allocation5], %s859_s30, %s859_s30, %s860_s15  }
 0x245   : > { %820 = dma.done.wait (%p1036_p9), [#allocation5], 256  }
 0x246   : > { %822 = vsyncadd (%p1036_p9), [#allocation5], 4294967040 }
 0x247 PF: > { %s16_s14 = sadd.s32 1, %s845_s14   ;;  %s1076_s9 = smov %s829_s10 }
 0x248   : > { %p13_p3 = scmp.ge.s32.totalorder %s16_s14, 4   ;;  %s1077_s10 = smov %s833_s11 }
 0x249   : > { %s1078_s11 = smov %s927_s21  ;;  %s1079_s12 = smov %s841_s13 }
 0x24a   : > { %s1080_s13 = smov %s1082_s16  ;;  %15 = sbr.rel (!%p13_p3) target bundleno = 5 (0x5), region = 77 }
 0x24f   :  { %481 = vsyncpa [#allocation4], 1 }
 0x250   :  { %483 = vsyncpa [#allocation4 + $0x1], 1 }
 0x251   :  { %484 = vsyncpa [#allocation5], 1 }
 0x252   :  { %486 = vsyncpa [#allocation5 + $0x1], 1 }

</bundles_post_ra>
